<compile_context>
chip_gen: v7x
topology: tpu7x:2x2x1
jax: 0.10.0
libtpu: 0.0.40
codegen_flags: <defaults>
</compile_context>

<pallas_src>
import jax
import jax.numpy as jnp
from jax import lax
from jax.experimental import pallas as pl
from jax.experimental.pallas import tpu as pltpu


# --------------------------------------------------------------------------
# Pass 0: dinv = rsqrt(rowsum(A) + 1)       (self-loop degree; always >= 1)
# --------------------------------------------------------------------------
def _degree_kernel(adj_ref, dinv_ref, acc_ref):
    k = pl.program_id(1)

    @pl.when(k == 0)
    def _():
        acc_ref[...] = jnp.zeros_like(acc_ref)

    acc_ref[...] += jnp.sum(adj_ref[...].astype(jnp.float32), axis=1,
                            keepdims=True)

    @pl.when(k == pl.num_programs(1) - 1)
    def _():
        dinv_ref[...] = lax.rsqrt(acc_ref[...] + 1.0)


# --------------------------------------------------------------------------
# Pass 1: S2 = dinv ⊙ (ReLU((A_hat @ x) @ W1 + b1) @ W2)
#   propagation of the (narrow) x, then the dense layer-1 + layer-2 linear
#   fused into the last K step of each row tile.
# --------------------------------------------------------------------------
def _layer1_kernel(adj_ref, x_ref, dinv_k_ref, dinv_i_ref,
                   w1_ref, b1_ref, w2_ref, s2_ref, acc_ref):
    i = pl.program_id(0)
    k = pl.program_id(1)

    @pl.when(k == 0)
    def _():
        acc_ref[...] = jnp.zeros_like(acc_ref)

    s = dinv_k_ref[...] * x_ref[...]                       # (T, in_dim) f32
    acc_ref[...] += jnp.dot(adj_ref[...], s.astype(jnp.bfloat16),
                            preferred_element_type=jnp.float32)

    @pl.when(k == i)                                       # self-loop (exact)
    def _():
        acc_ref[...] += s

    @pl.when(k == pl.num_programs(1) - 1)
    def _():
        p = dinv_i_ref[...] * acc_ref[...]                 # row block of A_hat @ x
        h = jnp.dot(p, w1_ref[...], preferred_element_type=jnp.float32)
        h = jnp.maximum(h + b1_ref[...], 0.0)
        # S2 = dinv ⊙ (H @ W2), ready for the layer-2 propagation.
        s2_ref[...] = dinv_i_ref[...] * jnp.dot(
            h, w2_ref[...], preferred_element_type=jnp.float32)


# --------------------------------------------------------------------------
# Pass 2: out = LayerNorm(dinv ⊙ ((A + I) @ S2) + b2)
# --------------------------------------------------------------------------
def _layer2_kernel(adj_ref, s2_ref, dinv_i_ref, b2_ref, gamma_ref, beta_ref,
                   out_ref, acc_ref):
    i = pl.program_id(0)
    k = pl.program_id(1)

    @pl.when(k == 0)
    def _():
        acc_ref[...] = jnp.zeros_like(acc_ref)

    s = s2_ref[...]                                        # (T, out_dim) f32
    acc_ref[...] += jnp.dot(adj_ref[...], s.astype(jnp.bfloat16),
                            preferred_element_type=jnp.float32)

    @pl.when(k == i)                                       # self-loop (exact)
    def _():
        acc_ref[...] += s

    @pl.when(k == pl.num_programs(1) - 1)
    def _():
        z = dinv_i_ref[...] * acc_ref[...] + b2_ref[...]
        mean = jnp.mean(z, axis=-1, keepdims=True)
        var = jnp.mean((z - mean) ** 2, axis=-1, keepdims=True)
        zn = (z - mean) * lax.rsqrt(var + 1e-5)
        out_ref[...] = zn * gamma_ref[...] + beta_ref[...]


# --------------------------------------------------------------------------
# Wrapper
# --------------------------------------------------------------------------
def decoder_forward(x, adj, params, *, tile=128):
    N, in_dim = x.shape
    h_dim = params["w1"].shape[1]
    out_dim = params["w2"].shape[1]

    T = min(tile, N)
    assert N % T == 0, "N must be divisible by the tile size"
    grid = (N // T, N // T)                                # (row tiles, K tiles)

    # 0/1 adjacency is exact in bf16; halves DMA bytes of the dominant operand.
    adj_bf16 = adj.astype(jnp.bfloat16)

    cparams = pltpu.CompilerParams(
        dimension_semantics=("parallel", "arbitrary"),
        vmem_limit_bytes=32 * 1024 * 1024,
    )

    adj_spec = pl.BlockSpec((T, T), lambda i, k: (i, k))
    dinv_k_spec = pl.BlockSpec((T, 1), lambda i, k: (k, 0))
    dinv_i_spec = pl.BlockSpec((T, 1), lambda i, k: (i, 0))

    def row_spec(f):
        return pl.BlockSpec((T, f), lambda i, k: (i, 0))

    def full_spec(shape):
        return pl.BlockSpec(shape, lambda i, k: (0, 0))

    # --- pass 0: degrees / dinv --------------------------------------------
    dinv = pl.pallas_call(
        _degree_kernel,
        out_shape=jax.ShapeDtypeStruct((N, 1), jnp.float32),
        grid=grid,
        in_specs=[adj_spec],
        out_specs=pl.BlockSpec((T, 1), lambda i, k: (i, 0)),
        scratch_shapes=[pltpu.VMEM((T, 1), jnp.float32)],
        compiler_params=cparams,
    )(adj_bf16)

    # --- pass 1: S2 = dinv ⊙ (ReLU((A_hat @ x) @ W1 + b1) @ W2) -------------
    s2 = pl.pallas_call(
        _layer1_kernel,
        out_shape=jax.ShapeDtypeStruct((N, out_dim), jnp.float32),
        grid=grid,
        in_specs=[
            adj_spec,
            pl.BlockSpec((T, in_dim), lambda i, k: (k, 0)),
            dinv_k_spec,
            dinv_i_spec,
            full_spec((in_dim, h_dim)),
            full_spec((1, h_dim)),
            full_spec((h_dim, out_dim)),
        ],
        out_specs=row_spec(out_dim),
        scratch_shapes=[pltpu.VMEM((T, in_dim), jnp.float32)],
        compiler_params=cparams,
    )(adj_bf16, x, dinv, dinv, params["w1"], params["b1"], params["w2"])

    # --- pass 2: out = LayerNorm(dinv ⊙ ((A + I) @ S2) + b2) ----------------
    out = pl.pallas_call(
        _layer2_kernel,
        out_shape=jax.ShapeDtypeStruct((N, out_dim), jnp.float32),
        grid=grid,
        in_specs=[
            adj_spec,
            pl.BlockSpec((T, out_dim), lambda i, k: (k, 0)),
            dinv_i_spec,
            full_spec((1, out_dim)),
            full_spec((1, out_dim)),
            full_spec((1, out_dim)),
        ],
        out_specs=row_spec(out_dim),
        scratch_shapes=[pltpu.VMEM((T, out_dim), jnp.float32)],
        compiler_params=cparams,
    )(adj_bf16, s2, dinv, params["b2"], params["gamma"], params["beta"])

    return out


# --------------------------------------------------------------------------
# Pure-JAX reference (f32 everywhere) for a correctness sanity check.
# --------------------------------------------------------------------------
def decoder_reference(x, adj, params):
    N = x.shape[0]
    a = adj + jnp.eye(N, dtype=adj.dtype)
    deg = jnp.sum(a, axis=1, keepdims=True)
    dinv = lax.rsqrt(deg)
    a_hat = dinv * a * dinv.T
    h = jnp.maximum(a_hat @ (x @ params["w1"]) + params["b1"], 0.0)
    z = a_hat @ (h @ params["w2"]) + params["b2"]
    mean = jnp.mean(z, axis=-1, keepdims=True)
    var = jnp.mean((z - mean) ** 2, axis=-1, keepdims=True)
    zn = (z - mean) * lax.rsqrt(var + 1e-5)
    return zn * params["gamma"] + params["beta"]


def init_params(key, in_dim, h_dim, out_dim):
    k1, k2 = jax.random.split(key)

    def glorot(k, fan_in, fan_out):
        scale = jnp.sqrt(6.0 / (fan_in + fan_out))
        return jax.random.uniform(k, (fan_in, fan_out), jnp.float32, -scale, scale)

    return {
        "w1": glorot(k1, in_dim, h_dim),
        "b1": jnp.zeros((1, h_dim), jnp.float32),
        "w2": glorot(k2, h_dim, out_dim),
        "b2": jnp.zeros((1, out_dim), jnp.float32),
        "gamma": jnp.ones((1, out_dim), jnp.float32),
        "beta": jnp.zeros((1, out_dim), jnp.float32),
    }


if __name__ == "__main__":
    key = jax.random.PRNGKey(0)
    k_x, k_adj, k_p = jax.random.split(key, 3)

    # Small but tiling-exercising shapes: 2x2 grid of 128-row tiles.
    N, in_dim, h_dim, out_dim = 256, 16, 32, 16

    x = jax.random.normal(k_x, (N, in_dim), jnp.float32)

    # Symmetric 0/1 adjacency, no self-loops (GCNConv adds them internally).
    a = jax.random.bernoulli(k_adj, 0.1, (N, N)).astype(jnp.float32)
    adj = jnp.clip(a + a.T, 0.0, 1.0)
    adj = adj * (1.0 - jnp.eye(N, dtype=jnp.float32))

    params = init_params(k_p, in_dim, h_dim, out_dim)

    out = decoder_forward(x, adj, params)
    jax.block_until_ready(out)
    assert out.shape == (N, out_dim)

    ref = decoder_reference(x, adj, params)
    # Loose tolerance: bf16 MXU operands (f32 accumulation) vs f32 reference.
    assert jnp.allclose(out, ref, atol=1e-1, rtol=1e-1), float(
        jnp.max(jnp.abs(out - ref)))

    print("KERNEL_OK")
</pallas_src>

<mosaic_0001>
module attributes {stable_mosaic.version = 11 : i64} {
  func.func @_degree_kernel(%arg0: i32, %arg1: i32, %arg2: memref<128x128xbf16, #tpu.memory_space<vmem>>, %arg3: memref<128x1xf32, #tpu.memory_space<vmem>>, %arg4: memref<128x1xf32, #tpu.memory_space<vmem>>) attributes {dimension_semantics = [#tpu.dimension_semantics<parallel>, #tpu.dimension_semantics<arbitrary>], iteration_bounds = array<i64: 2, 2>, scalar_prefetch = 0 : i64, scratch_operands = 1 : i64, tpu.core_type = #tpu.core_type<tc>, window_params = [{transform_indices = @transform_0, window_bounds = array<i64: 128, 128>}, {transform_indices = @transform_1, window_bounds = array<i64: 128, 1>}]} {
    %c0_i32 = arith.constant 0 : i32
    %0 = arith.cmpi eq, %arg1, %c0_i32 : i32
    %1 = arith.extui %0 : i1 to i32
    %c0_i32_0 = arith.constant 0 : i32
    %2 = arith.cmpi ne, %1, %c0_i32_0 : i32
    scf.if %2 {
      %cst_7 = arith.constant 0.000000e+00 : f32
      %13 = vector.broadcast %cst_7 : f32 to vector<128x1xf32>
      %c0_8 = arith.constant 0 : index
      %c0_9 = arith.constant 0 : index
      %14 = vector.load %arg4[%c0_8, %c0_9] : memref<128x1xf32, #tpu.memory_space<vmem>>, vector<128x1xf32>
      tpu.vector_store %arg4[%c0_8, %c0_9], %13 {strides = array<i32>} : memref<128x1xf32, #tpu.memory_space<vmem>>, vector<128x1xf32>,
    } else {
    }
    %c0 = arith.constant 0 : index
    %c0_1 = arith.constant 0 : index
    %3 = vector.load %arg4[%c0, %c0_1] : memref<128x1xf32, #tpu.memory_space<vmem>>, vector<128x1xf32>
    %c0_2 = arith.constant 0 : index
    %c0_3 = arith.constant 0 : index
    %4 = vector.load %arg2[%c0_2, %c0_3] : memref<128x128xbf16, #tpu.memory_space<vmem>>, vector<128x128xbf16>
    %5 = arith.extf %4 : vector<128x128xbf16> to vector<128x128xf32>
    %cst = arith.constant dense<0.000000e+00> : vector<128xf32>
    %6 = vector.multi_reduction <add>, %5, %cst [1] : vector<128x128xf32> to vector<128xf32>
    %7 = vector.shape_cast %6 : vector<128xf32> to vector<128x1xf32>
    %8 = arith.addf %3, %7 : vector<128x1xf32>
    %c0_4 = arith.constant 0 : index
    %c0_5 = arith.constant 0 : index
    %9 = vector.load %arg4[%c0_4, %c0_5] : memref<128x1xf32, #tpu.memory_space<vmem>>, vector<128x1xf32>
    tpu.vector_store %arg4[%c0_4, %c0_5], %8 {strides = array<i32>} : memref<128x1xf32, #tpu.memory_space<vmem>>, vector<128x1xf32>,
    %c1_i32 = arith.constant 1 : i32
    %10 = arith.cmpi eq, %arg1, %c1_i32 : i32
    %11 = arith.extui %10 : i1 to i32
    %c0_i32_6 = arith.constant 0 : i32
    %12 = arith.cmpi ne, %11, %c0_i32_6 : i32
    scf.if %12 {
      %c0_7 = arith.constant 0 : index
      %c0_8 = arith.constant 0 : index
      %13 = vector.load %arg4[%c0_7, %c0_8] : memref<128x1xf32, #tpu.memory_space<vmem>>, vector<128x1xf32>
      %cst_9 = arith.constant 1.000000e+00 : f32
      %14 = vector.broadcast %cst_9 : f32 to vector<128x1xf32>
      %15 = arith.addf %13, %14 : vector<128x1xf32>
      %16 = math.rsqrt %15 : vector<128x1xf32>
      %c0_10 = arith.constant 0 : index
      %c0_11 = arith.constant 0 : index
      %17 = vector.load %arg3[%c0_10, %c0_11] : memref<128x1xf32, #tpu.memory_space<vmem>>, vector<128x1xf32>
      tpu.vector_store %arg3[%c0_10, %c0_11], %16 {strides = array<i32>} : memref<128x1xf32, #tpu.memory_space<vmem>>, vector<128x1xf32>,
    } else {
    }
    return
  }
  func.func @transform_0(%arg0: i32, %arg1: i32) -> (i32, i32) {
    %c0_i32 = arith.constant 0 : i32
    return %arg0, %arg1 : i32, i32
  }
  func.func @transform_1(%arg0: i32, %arg1: i32) -> (i32, i32) {
    %c0_i32 = arith.constant 0 : i32
    %c0_i32_0 = arith.constant 0 : i32
    return %arg0, %c0_i32 : i32, i32
  }
}

</mosaic_0001>

<bundles_post_ra>
// kernel: tpu_custom_call.1
= control target key start
LH: loop header
LB: loop body
LE: loop exit
PB: predicated region body
PF: predicated region fallthrough
CT: control target
= control target key end

     0   :  { %6 = vsyncpa [#allocation4], 0  ;;  %s942_s0 = inlined_call_operand.hbm [shape: bf16[256,256], index: 0, kind: input, shape index: {}]   ;;  %s943_s1 = inlined_call_operand.vmem [shape: f32[256,1], index: 1, kind: output, shape index: {}]  }
   0x1   :  { %8 = vsyncpa [#allocation4 + $0x1], 0  ;;  %s714_s6 = smov 0   ;;  %s716_s7 = smov 0  }
   0x2   :  { %s718_s8 = smov 0   ;;  %s720_s9 = smov 0  }
   0x3   :  { %s722_s10 = smov 0   ;;  %s724_s11 = smov 0  }
   0x4   :  { %s726_s12 = smov 0   ;;  %s728_s13 = smov 0  }
   0x5 LB: > { %s438_s14 = sadd.s32 4294967295, %s697_s13   ;;  %s23_s15 = sadd.s32 1, %s689_s11  ;;  %s697_s13 = sphi %s728_s13, %s14_s13   ;;  %s693_s12 = sphi %s726_s12, %s954_s12   ;;  %s689_s11 = sphi %s724_s11, %s953_s11   ;;  %s685_s10 = sphi %s722_s10, %s952_s10   ;;  %s681_s9 = sphi %s720_s9, %s951_s9   ;;  %s677_s8 = sphi %s718_s8, %s950_s8   ;;  %s673_s7 = sphi %s716_s7, %s949_s7   ;;  %s669_s6 = sphi %s714_s6, %s948_s6  }
   0x6   : > { %p24_p0 = scmp.ge.s32.totalorder %s23_s15, 2  ;;  %s26_s16 = sadd.s32 1, %s693_s12 }
   0x7   : > { %s35_s17 = sadd.s32 1, %s677_s8  ;;  %p42_p1 = scmp.ne.s32.totalorder %s677_s8, %s673_s7 }
   0x8   : > { %s956_s15 = smov (%p24_p0, %s23_s15), 0  ;;  %s958_s16 = smov (!%p24_p0, %s26_s16), %s693_s12 }
   0x9   : > { %s31_s18 = ssub.s32 %s689_s11, %s956_s15  ;;  %p43_p2 = scmp.eq.s32.totalorder %s697_s13, 0 }
   0xa   : > { %p28_p3 = scmp.ge.s32.totalorder %s958_s16, 2  ;;  %p48_p4 = scmp.ne.s32.totalorder %s673_s7, %s669_s6 }
   0xb   : > { %p765_p5 = por %p43_p2, %p42_p1  ;;  %p49_p6 = scmp.eq.s32.totalorder %s438_s14, 0 }
   0xc   : > { %s960_s16 = smov (%p28_p3, %s958_s16), 0  ;;  %p500_p8 = scmp.lt.s32.totalorder %s697_s13, 4 }
   0xd   : > { %p771_p7 = por %p49_p6, %p48_p4  ;;  %s30_s21 = ssub.s32 %s693_s12, %s960_s16 }
   0xe   : > { %s32_s22 = sor.u32 %s31_s18, %s30_s21  ;;  %s98_s23 = sand.u32 1, %s677_s8  }
   0xf   : > { %p33_p9 = scmp.eq.s32.totalorder %s32_s22, 0  ;;  %s442_s24 = sshll.u32 %s98_s23, 6 }
  0x10   : > { %s454_s25 = sshll.u32 %s693_s12, 5  ;;  %s102_s29 = scalar_lea.vmem [#allocation3], %s442_s24 }
  0x11   : > { %s781_s26 = scalar_select %p33_p9, %s677_s8, %s35_s17  }
  0x12   : > { %s108_s27 = sadd.s32 %s689_s11, %s454_s25  ;;  %s111_s30 = sshll.u32 %s102_s29, 4  ;;  %s789_s30 = int_to_ptr.vmem [resolvable:$true] %s111_s30 }
  0x13   : > { %s445_s28 = sshll.u32 %s108_s27, 6  ;;  %p795_p10 = pnand %p500_p8, %p765_p5 }
  0x14   : > { %s787_s4 = scalar_lea.hbm %s942_s0, %s445_s28  ;;  %s800_s6 = scalar_lea.sflag [#allocation4], %s98_s23 }
  0x15   : > { %s601_s14 = scalar_lea.hbm %s787_s4, 1024  ;;  %p603_p13 = pneg %p795_p10 }
  0x16   : > { %p602_p12 = scmp.ne.s32.totalorder %s787_s4, %s601_s14  ;;  %s606_s19 = scalar_lea.hbm %s942_s0, 4096 }
  0x17   : > { %p607_p2 = scmp.lt.u32.totalorder %s787_s4, %s942_s0  ;;  %p608_p3 = scmp.lt.u32.totalorder %s606_s19, %s601_s14 }
  0x18   : > { %p604_p0 = pnand %p603_p13, %p602_p12  ;;  %p610_p5 = scmp.lt.u32.totalorder %s601_s14, %s787_s4 }
  0x19   : > { %p609_p4 = por %p608_p3, %p607_p2 }
  0x1a   : > { %p605_p1 = pneg %p604_p0 }
  0x1b   : > { %p611_p6 = por %p610_p5, %p609_p4 }
  0x1d   : > { %p612_p8 = pnand %p611_p6, %p605_p1 }
  0x1f   : > { %615 = shalt.err (!%p612_p8)
}
  0x20   : > { %s616_s23 = scalar_lea.vmem %s789_s30, 1024  ;;  %s699_s24 = smov [#allocation3]  }
  0x21   : > { %p617_p9 = scmp.ne.s32.totalorder %s789_s30, %s616_s23  ;;  %s621_s25 = sshll.u32 %s699_s24, 4  ;;  %s622_s25 = int_to_ptr.vmem [resolvable:$false] %s621_s25 }
  0x22   : > { %s623_s27 = scalar_lea.vmem %s622_s25, 2048  ;;  %p624_p11 = scmp.lt.s32.totalorder %s789_s30, %s622_s25 }
  0x23   : > { %p619_p12 = pnand %p617_p9, %p603_p13  ;;  %p625_p2 = scmp.lt.s32.totalorder %s623_s27, %s616_s23 }
  0x25   : > { %p620_p0 = pneg %p619_p12  ;;  %p626_p3 = por %p625_p2, %p624_p11 }
  0x27   : > { %p627_p4 = pnand %p626_p3, %p620_p0 }
  0x29   : > { %630 = shalt.err (!%p627_p4)
}
  0x2a   : > { %s700_s28 = smov 128   ;;  %s701_s29 = smov 64  }
  0x2b   : > { %s702_s2 = smov 4   ;;  %p119_p13 = scmp.lt.s32.totalorder %s697_s13, 5 }
  0x2c   : > { %499 = dma.hbm_to_vmem [thread:$0]  (!%p795_p10), %s787_s4, 1024, %s789_s30, %s800_s6, %s700_s28, %s701_s29, %s702_s2  }
  0x2d   : > { %p947_p1 = scmp.ge.s32.totalorder %s697_s13, 1 }
  0x2f   : > { %p120_p5 = pnand %p947_p1, %p119_p13 }
  0x30   : > { %s125_s3 = sand.u32 (!%p120_p5), 1, %s673_s7  }
  0x31   : > { %123 = sbr.rel (%p120_p5) target bundleno = 265 (0x109), region = 24  ;;  %s447_s14 = sshll.u32 (!%p120_p5), %s125_s3, 6 }
  0x32   : > { %s126_s17 = scalar_lea.sflag (!%p120_p5), [#allocation4], %s125_s3  ;;  %s832_s18 = scalar_lea.vmem (!%p120_p5), [#allocation3], %s447_s14 }
  0x38   : > { %664 = dma.done.wait (%p771_p7), %s126_s17, 1024  }
  0x39   : > { %666 = vsyncadd (%p771_p7), %s126_s17, 4294966272  ;;  %s448_s19 = sshll.u32 %s685_s10, 4  ;;  %p450_p10 = scmp.ne.s32.totalorder %s681_s9, 0 }
  0x3a   : > { %p150_p11 = scmp.lt.s32.totalorder %s448_s19, 31  ;;  %vm159_vm0 = vcmask (!%p450_p10), 7168   ;;  %v703_v0 = vmov (!%p450_p10), 0.0  }
  0x3b   : > { %158 = sbr.rel (%p450_p10) target bundleno = 67 (0x43), region = 32  ;;  %160 = vst.msk [vmem:[#allocation2] sm:$0xff] (!%p450_p10), %vm159_vm0, %v703_v0  ;;  %161 = vst.msk [vmem:[#allocation2 + $0x8] sm:$0xff] (!%p450_p10), %vm159_vm0, %v703_v0 }
  0x3c   : > { %s962_s19 = smov (!%p150_p11, %s448_s19), 31  ;;  %162 = vst.msk [vmem:[#allocation2 + $0x10] sm:$0xff] (!%p450_p10), %vm159_vm0, %v703_v0  ;;  %163 = vst.msk [vmem:[#allocation2 + $0x18] sm:$0xff] (!%p450_p10), %vm159_vm0, %v703_v0 }
  0x3d   : > { %s449_s30 = sshll.u32 %s962_s19, 3  ;;  %164 = vst.msk [vmem:[#allocation2 + $0x20] sm:$0xff] (!%p450_p10), %vm159_vm0, %v703_v0  ;;  %165 = vst.msk [vmem:[#allocation2 + $0x28] sm:$0xff] (!%p450_p10), %vm159_vm0, %v703_v0 }
  0x3e   : > { %s842_s6 = scalar_lea.vmem %s943_s1, %s449_s30  ;;  %166 = vst.msk [vmem:[#allocation2 + $0x30] sm:$0xff] (!%p450_p10), %vm159_vm0, %v703_v0  ;;  %167 = vst.msk [vmem:[#allocation2 + $0x38] sm:$0xff] (!%p450_p10), %vm159_vm0, %v703_v0 }
  0x3f   : > { %168 = vst.msk [vmem:[#allocation2 + $0x40] sm:$0xff] (!%p450_p10), %vm159_vm0, %v703_v0  ;;  %169 = vst.msk [vmem:[#allocation2 + $0x48] sm:$0xff] (!%p450_p10), %vm159_vm0, %v703_v0 }
  0x40   : > { %170 = vst.msk [vmem:[#allocation2 + $0x50] sm:$0xff] (!%p450_p10), %vm159_vm0, %v703_v0  ;;  %171 = vst.msk [vmem:[#allocation2 + $0x58] sm:$0xff] (!%p450_p10), %vm159_vm0, %v703_v0 }
  0x41   : > { %172 = vst.msk [vmem:[#allocation2 + $0x60] sm:$0xff] (!%p450_p10), %vm159_vm0, %v703_v0  ;;  %173 = vst.msk [vmem:[#allocation2 + $0x68] sm:$0xff] (!%p450_p10), %vm159_vm0, %v703_v0 }
  0x42   : > { %174 = vst.msk [vmem:[#allocation2 + $0x70] sm:$0xff] %vm159_vm0, %v703_v0  ;;  %175 = vst.msk [vmem:[#allocation2 + $0x78] sm:$0xff] %vm159_vm0, %v703_v0 }
  0x43 PF: > { %v487_v1 = vld [vmem:[%s832_s18 + $0x8] sm:$0xff]   ;;  %v456_v2 = vld [vmem:[%s832_s18] sm:$0xff]   ;;  %v488_v7 = vld [vmem:[%s832_s18 + $0x10] sm:$0xff]   ;;  %vm272_vm1 = vcmask 7168   ;;  %p451_p7 = scmp.ne.s32.totalorder %s681_s9, 1 }
  0x44   : > { %v461_v3 = vunpack.c.l.bf16 %v487_v1  ;;  %v457_v4 = vunpack.c.l.bf16 %v456_v2  ;;  %v462_v5 = vunpack.c.h.bf16 %v487_v1  ;;  %v458_v6 = vunpack.c.h.bf16 %v456_v2  ;;  %v489_v10 = vld [vmem:[%s832_s18 + $0x18] sm:$0xff]   ;;  %v490_v13 = vld [vmem:[%s832_s18 + $0x20] sm:$0xff]   ;;  %v491_v16 = vld [vmem:[%s832_s18 + $0x28] sm:$0xff]  }
  0x45   : > { %v466_v8 = vunpack.c.h.bf16 %v488_v7  ;;  %v465_v9 = vunpack.c.l.bf16 %v488_v7  ;;  %v470_v11 = vunpack.c.h.bf16 %v489_v10  ;;  %v469_v12 = vunpack.c.l.bf16 %v489_v10  ;;  %v492_v19 = vld [vmem:[%s832_s18 + $0x30] sm:$0xff]   ;;  %v493_v22 = vld [vmem:[%s832_s18 + $0x38] sm:$0xff]   ;;  %v176_v26 = vld [vmem:[#allocation2] sm:$0xff] }
  0x46   : > { %228 = vadd.xlane.f32.xlu1 %v461_v3  ;;  %224 = vadd.xlane.f32.xlu0 %v457_v4  ;;  %v474_v14 = vunpack.c.h.bf16 %v490_v13  ;;  %v473_v15 = vunpack.c.l.bf16 %v490_v13  ;;  %v478_v17 = vunpack.c.h.bf16 %v491_v16  ;;  %v477_v18 = vunpack.c.l.bf16 %v491_v16  ;;  %v178_v25 = vld [vmem:[#allocation2 + $0x10] sm:$0xff]  ;;  %v179_v31 = vld [vmem:[#allocation2 + $0x18] sm:$0xff]  ;;  %v177_v32 = vld [vmem:[#allocation2 + $0x8] sm:$0xff] }
  0x47   : > { %v482_v20 = vunpack.c.h.bf16 %v492_v19  ;;  %v481_v21 = vunpack.c.l.bf16 %v492_v19  ;;  %v486_v23 = vunpack.c.h.bf16 %v493_v22  ;;  %v485_v24 = vunpack.c.l.bf16 %v493_v22  ;;  %v181_v37 = vld [vmem:[#allocation2 + $0x28] sm:$0xff]  ;;  %v180_v38 = vld [vmem:[#allocation2 + $0x20] sm:$0xff]  ;;  %v183_v43 = vld [vmem:[#allocation2 + $0x38] sm:$0xff] }
  0x48   : > { %v182_v44 = vld [vmem:[#allocation2 + $0x30] sm:$0xff]  ;;  %v185_v49 = vld [vmem:[#allocation2 + $0x48] sm:$0xff]  ;;  %v184_v50 = vld [vmem:[#allocation2 + $0x40] sm:$0xff] }
  0x49   : > { %v187_v55 = vld [vmem:[#allocation2 + $0x58] sm:$0xff]  ;;  %v186_v56 = vld [vmem:[#allocation2 + $0x50] sm:$0xff]  ;;  %v189_v61 = vld [vmem:[#allocation2 + $0x68] sm:$0xff] }
  0x4a   : > { %230 = vadd.xlane.f32.xlu1 %v462_v5  ;;  %226 = vadd.xlane.f32.xlu0 %v458_v6  ;;  %v188_v62 = vld [vmem:[#allocation2 + $0x60] sm:$0xff]  ;;  %v191_v3 = vld [vmem:[#allocation2 + $0x78] sm:$0xff]  ;;  %v190_v4 = vld [vmem:[#allocation2 + $0x70] sm:$0xff] }
  0x4e   : > { %234 = vadd.xlane.f32.xlu1 %v466_v8  ;;  %232 = vadd.xlane.f32.xlu0 %v465_v9 }
  0x52   : > { %238 = vadd.xlane.f32.xlu1 %v470_v11  ;;  %236 = vadd.xlane.f32.xlu0 %v469_v12 }
  0x56   : > { %242 = vadd.xlane.f32.xlu1 %v474_v14  ;;  %240 = vadd.xlane.f32.xlu0 %v473_v15 }
  0x5a   : > { %246 = vadd.xlane.f32.xlu1 %v478_v17  ;;  %244 = vadd.xlane.f32.xlu0 %v477_v18 }
  0x5e   : > { %250 = vadd.xlane.f32.xlu1 %v482_v20  ;;  %248 = vadd.xlane.f32.xlu0 %v481_v21 }
  0x62   : > { %254 = vadd.xlane.f32.xlu1 %v486_v23  ;;  %252 = vadd.xlane.f32.xlu0 %v485_v24 }
  0xd3   : > { %v229_v27 = vpop.xlane.xlu1 %228  ;;  %v225_v28 = vpop.xlane.xlu0 %224 }
  0xd4   : > { %v258_v29 = vadd.f32 %v229_v27, %v178_v25  ;;  %v256_v30 = vadd.f32 %v225_v28, %v176_v26 }
  0xd6   : > { %275 = vst.msk [vmem:[#allocation2 + $0x10] sm:$0xff] %vm272_vm1, %v258_v29  ;;  %273 = vst.msk [vmem:[#allocation2] sm:$0xff] %vm272_vm1, %v256_v30 }
  0xd7   : > { %v231_v33 = vpop.xlane.xlu1 %230  ;;  %v227_v34 = vpop.xlane.xlu0 %226 }
  0xd8   : > { %v259_v35 = vadd.f32 %v231_v33, %v179_v31  ;;  %v257_v36 = vadd.f32 %v227_v34, %v177_v32 }
  0xda   : > { %276 = vst.msk [vmem:[#allocation2 + $0x18] sm:$0xff] %vm272_vm1, %v259_v35  ;;  %274 = vst.msk [vmem:[#allocation2 + $0x8] sm:$0xff] %vm272_vm1, %v257_v36 }
  0xdb   : > { %v235_v39 = vpop.xlane.xlu1 %234  ;;  %v233_v40 = vpop.xlane.xlu0 %232 }
  0xdc   : > { %v261_v41 = vadd.f32 %v235_v39, %v181_v37  ;;  %v260_v42 = vadd.f32 %v233_v40, %v180_v38 }
  0xdd   : > { %v293_v9 = vld [vmem:[#allocation2] sm:$0xff] (!%p451_p7)  ;;  %v295_v11 = vld [vmem:[#allocation2 + $0x10] sm:$0xff] (!%p451_p7) }
  0xde   : > { %278 = vst.msk [vmem:[#allocation2 + $0x28] sm:$0xff] %vm272_vm1, %v261_v41  ;;  %277 = vst.msk [vmem:[#allocation2 + $0x20] sm:$0xff] %vm272_vm1, %v260_v42  ;;  %v309_v12 = vadd.f32 (!%p451_p7), 1.0, %v293_v9  ;;  %v311_v14 = vadd.f32 (!%p451_p7), 1.0, %v295_v11 }
  0xdf   : > { %v239_v45 = vpop.xlane.xlu1 %238  ;;  %v237_v46 = vpop.xlane.xlu0 %236 }
  0xe0   : > { %v263_v47 = vadd.f32 %v239_v45, %v183_v43  ;;  %v262_v48 = vadd.f32 %v237_v46, %v182_v44  ;;  %569 = vrsqrt.f32 (!%p451_p7), %v309_v12 }
  0xe1   : > { %v294_v10 = vld [vmem:[#allocation2 + $0x8] sm:$0xff] (!%p451_p7)  ;;  %v296_v15 = vld [vmem:[#allocation2 + $0x18] sm:$0xff] (!%p451_p7) }
  0xe2   : > { %280 = vst.msk [vmem:[#allocation2 + $0x38] sm:$0xff] %vm272_vm1, %v263_v47  ;;  %279 = vst.msk [vmem:[#allocation2 + $0x30] sm:$0xff] %vm272_vm1, %v262_v48  ;;  %v310_v13 = vadd.f32 (!%p451_p7), 1.0, %v294_v10  ;;  %v312_v18 = vadd.f32 (!%p451_p7), 1.0, %v296_v15 }
  0xe3   : > { %v243_v51 = vpop.xlane.xlu1 %242  ;;  %v241_v52 = vpop.xlane.xlu0 %240 }
  0xe4   : > { %v265_v53 = vadd.f32 %v243_v51, %v185_v49  ;;  %v264_v54 = vadd.f32 %v241_v52, %v184_v50  ;;  %571 = vrsqrt.f32 (!%p451_p7), %v310_v13 }
  0xe5   : > { %v297_v16 = vld [vmem:[#allocation2 + $0x20] sm:$0xff] (!%p451_p7)  ;;  %v298_v17 = vld [vmem:[#allocation2 + $0x28] sm:$0xff] (!%p451_p7)  ;;  %573 = vrsqrt.f32 (!%p451_p7), %v311_v14 }
  0xe6   : > { %282 = vst.msk [vmem:[#allocation2 + $0x48] sm:$0xff] %vm272_vm1, %v265_v53  ;;  %281 = vst.msk [vmem:[#allocation2 + $0x40] sm:$0xff] %vm272_vm1, %v264_v54  ;;  %v313_v20 = vadd.f32 (!%p451_p7), 1.0, %v297_v16  ;;  %v314_v22 = vadd.f32 (!%p451_p7), 1.0, %v298_v17  ;;  %575 = vrsqrt.f32 (!%p451_p7), %v312_v18 }
  0xe7   : > { %v247_v57 = vpop.xlane.xlu1 %246  ;;  %v245_v58 = vpop.xlane.xlu0 %244 }
  0xe8   : > { %v267_v59 = vadd.f32 %v247_v57, %v187_v55  ;;  %v266_v60 = vadd.f32 %v245_v58, %v186_v56  ;;  %577 = vrsqrt.f32 (!%p451_p7), %v313_v20 }
  0xe9   : > { %v299_v19 = vld [vmem:[#allocation2 + $0x30] sm:$0xff] (!%p451_p7)  ;;  %v300_v21 = vld [vmem:[#allocation2 + $0x38] sm:$0xff] (!%p451_p7)  ;;  %579 = vrsqrt.f32 (!%p451_p7), %v314_v22 }
  0xea   : > { %284 = vst.msk [vmem:[#allocation2 + $0x58] sm:$0xff] %vm272_vm1, %v267_v59  ;;  %283 = vst.msk [vmem:[#allocation2 + $0x50] sm:$0xff] %vm272_vm1, %v266_v60  ;;  %v315_v24 = vadd.f32 (!%p451_p7), 1.0, %v299_v19  ;;  %v316_v26 = vadd.f32 (!%p451_p7), 1.0, %v300_v21  ;;  %v570_v39 = vpop.eup (!%p451_p7), %569 }
  0xeb   : > { %v251_v63 = vpop.xlane.xlu1 %250  ;;  %v249_v0 = vpop.xlane.xlu0 %248  ;;  %341 = vst.msk [vmem:[%s842_s6] sm:$0xff] (!%p451_p7), %vm272_vm1, %v570_v39 }
  0xec   : > { %v269_v1 = vadd.f32 %v251_v63, %v189_v61  ;;  %v268_v2 = vadd.f32 %v249_v0, %v188_v62  ;;  %292 = sbr.rel (%p451_p7) target bundleno = 265 (0x109), region = 36  ;;  %581 = vrsqrt.f32 (!%p451_p7), %v315_v24 }
  0xed   : > { %v301_v23 = vld [vmem:[#allocation2 + $0x40] sm:$0xff] (!%p451_p7)  ;;  %v302_v25 = vld [vmem:[#allocation2 + $0x48] sm:$0xff] (!%p451_p7)  ;;  %583 = vrsqrt.f32 (!%p451_p7), %v316_v26 }
  0xee   : > { %286 = vst.msk [vmem:[#allocation2 + $0x68] sm:$0xff] %vm272_vm1, %v269_v1  ;;  %285 = vst.msk [vmem:[#allocation2 + $0x60] sm:$0xff] %vm272_vm1, %v268_v2  ;;  %v317_v28 = vadd.f32 (!%p451_p7), 1.0, %v301_v23  ;;  %v318_v30 = vadd.f32 (!%p451_p7), 1.0, %v302_v25  ;;  %v572_v41 = vpop.eup (!%p451_p7), %571 }
  0xef   : > { %v255_v5 = vpop.xlane.xlu1 %254  ;;  %v253_v6 = vpop.xlane.xlu0 %252  ;;  %342 = vst.msk [vmem:[%s842_s6 + $0x8] sm:$0xff] (!%p451_p7), %vm272_vm1, %v572_v41 }
  0xf0   : > { %v271_v7 = vadd.f32 %v255_v5, %v191_v3  ;;  %v270_v8 = vadd.f32 %v253_v6, %v190_v4  ;;  %585 = vrsqrt.f32 (!%p451_p7), %v317_v28  ;;  %v574_v43 = vpop.eup (!%p451_p7), %573 }
  0xf1   : > { %v303_v27 = vld [vmem:[#allocation2 + $0x50] sm:$0xff] (!%p451_p7)  ;;  %v304_v29 = vld [vmem:[#allocation2 + $0x58] sm:$0xff] (!%p451_p7)  ;;  %587 = vrsqrt.f32 (!%p451_p7), %v318_v30  ;;  %v576_v44 = vpop.eup (!%p451_p7), %575  ;;  %343 = vst.msk [vmem:[%s842_s6 + $0x10] sm:$0xff] (!%p451_p7), %vm272_vm1, %v574_v43 }
  0xf2   : > { %288 = vst.msk [vmem:[#allocation2 + $0x78] sm:$0xff] %vm272_vm1, %v271_v7  ;;  %287 = vst.msk [vmem:[#allocation2 + $0x70] sm:$0xff] %vm272_vm1, %v270_v8  ;;  %v319_v32 = vadd.f32 (!%p451_p7), 1.0, %v303_v27  ;;  %v320_v34 = vadd.f32 (!%p451_p7), 1.0, %v304_v29  ;;  %v578_v45 = vpop.eup (!%p451_p7), %577 }
  0xf3   : > { %344 = vst.msk [vmem:[%s842_s6 + $0x18] sm:$0xff] %vm272_vm1, %v576_v44  ;;  %v580_v46 = vpop.eup %579  ;;  %345 = vst.msk [vmem:[%s842_s6 + $0x20] sm:$0xff] %vm272_vm1, %v578_v45 }
  0xf4   : > { %589 = vrsqrt.f32 %v319_v32  ;;  %346 = vst.msk [vmem:[%s842_s6 + $0x28] sm:$0xff] %vm272_vm1, %v580_v46 }
  0xf5   : > { %v305_v31 = vld [vmem:[#allocation2 + $0x60] sm:$0xff]  ;;  %v306_v33 = vld [vmem:[#allocation2 + $0x68] sm:$0xff]  ;;  %591 = vrsqrt.f32 %v320_v34 }
  0xf6   : > { %v321_v36 = vadd.f32 1.0, %v305_v31  ;;  %v322_v38 = vadd.f32 1.0, %v306_v33  ;;  %v582_v47 = vpop.eup %581 }
  0xf7   : > { %v584_v48 = vpop.eup %583  ;;  %347 = vst.msk [vmem:[%s842_s6 + $0x30] sm:$0xff] %vm272_vm1, %v582_v47 }
  0xf8   : > { %593 = vrsqrt.f32 %v321_v36  ;;  %348 = vst.msk [vmem:[%s842_s6 + $0x38] sm:$0xff] %vm272_vm1, %v584_v48 }
  0xf9   : > { %v307_v35 = vld [vmem:[#allocation2 + $0x70] sm:$0xff]  ;;  %v308_v37 = vld [vmem:[#allocation2 + $0x78] sm:$0xff]  ;;  %595 = vrsqrt.f32 %v322_v38 }
  0xfa   : > { %v323_v40 = vadd.f32 1.0, %v307_v35  ;;  %v324_v42 = vadd.f32 1.0, %v308_v37  ;;  %v586_v49 = vpop.eup %585 }
  0xfb   : > { %v588_v50 = vpop.eup %587  ;;  %349 = vst.msk [vmem:[%s842_s6 + $0x40] sm:$0xff] %vm272_vm1, %v586_v49 }
  0xfc   : > { %597 = vrsqrt.f32 %v323_v40  ;;  %350 = vst.msk [vmem:[%s842_s6 + $0x48] sm:$0xff] %vm272_vm1, %v588_v50 }
  0xfd   : > { %599 = vrsqrt.f32 %v324_v42 }
  0xfe   : > { %v590_v51 = vpop.eup %589 }
  0xff   : > { %v592_v52 = vpop.eup %591  ;;  %351 = vst.msk [vmem:[%s842_s6 + $0x50] sm:$0xff] %vm272_vm1, %v590_v51 }
 0x100   : > { %352 = vst.msk [vmem:[%s842_s6 + $0x58] sm:$0xff] %vm272_vm1, %v592_v52 }
 0x102   : > { %v594_v53 = vpop.eup %593 }
 0x103   : > { %v596_v54 = vpop.eup %595  ;;  %353 = vst.msk [vmem:[%s842_s6 + $0x60] sm:$0xff] %vm272_vm1, %v594_v53 }
 0x104   : > { %354 = vst.msk [vmem:[%s842_s6 + $0x68] sm:$0xff] %vm272_vm1, %v596_v54 }
 0x106   : > { %v598_v55 = vpop.eup %597 }
 0x107   : > { %v600_v56 = vpop.eup %599  ;;  %355 = vst.msk [vmem:[%s842_s6 + $0x70] sm:$0xff] %vm272_vm1, %v598_v55 }
 0x108   : > { %356 = vst.msk [vmem:[%s842_s6 + $0x78] sm:$0xff] %vm272_vm1, %v600_v56 }
 0x109 PF: > { %s14_s13 = sadd.s32 1, %s697_s13   ;;  %s948_s6 = smov %s673_s7 }
 0x10a   : > { %p11_p6 = scmp.ge.s32.totalorder %s14_s13, 6   ;;  %s949_s7 = smov %s677_s8 }
 0x10b   : > { %s950_s8 = smov %s781_s26  ;;  %s951_s9 = smov %s689_s11 }
 0x10c   : > { %s952_s10 = smov %s693_s12  ;;  %s953_s11 = smov %s956_s15 }
 0x10d   : > { %s954_s12 = smov %s960_s16  ;;  %13 = sbr.rel (!%p11_p6) target bundleno = 5 (0x5), region = 72 }
 0x114   :  { %379 = vsyncpa [#allocation4], 1 }
 0x115   :  { %381 = vsyncpa [#allocation4 + $0x1], 1 }

</bundles_post_ra>
